<compile_context>
chip_gen: v5e
topology: v5e:2x2
jax: 0.10.0
libtpu: 0.0.40
codegen_flags: <defaults>
</compile_context>

<pallas_src>
import functools

import jax
import jax.numpy as jnp
from jax import lax
from jax.experimental import pallas as pl
from jax.experimental.pallas import tpu as pltpu


MXU_DTYPE = jnp.bfloat16   # matmul operand dtype (f32 accumulation everywhere)


def _round_up(x, m):
    return (x + m - 1) // m * m


# --------------------------------------------------------------------------
# Hoisted input projection kernel:  gi = (x * mask) @ W_ih^T + b_ih
# One large (rows, Dp) x (Dp, 3Hp) matmul over all timesteps at once.
# --------------------------------------------------------------------------
def _proj_kernel(x_ref, w_ref, b_ref, o_ref):
    o_ref[...] = (jnp.dot(x_ref[...].astype(w_ref.dtype), w_ref[...],
                          preferred_element_type=jnp.float32)
                  + b_ref[...]).astype(o_ref.dtype)


def _proj_dropout_kernel(x_ref, m_ref, w_ref, b_ref, o_ref):
    xd = (x_ref[...] * m_ref[...]).astype(w_ref.dtype)   # fused inverted dropout
    o_ref[...] = (jnp.dot(xd, w_ref[...],
                          preferred_element_type=jnp.float32)
                  + b_ref[...]).astype(o_ref.dtype)


def gru_input_projection(x_flat, wih_t, bih, mask_flat=None, *, row_tile=None):
    """x_flat: (T*Bp, Dp) f32 -> gi_flat: (T*Bp, 3Hp) f32."""
    TB, Dp = x_flat.shape
    N3 = wih_t.shape[1]
    if row_tile is None:
        row_tile = min(TB, 512)          # TB is a multiple of 8 (Bp padded)
    grid = (pl.cdiv(TB, row_tile),)

    if mask_flat is not None:
        kernel = _proj_dropout_kernel
        args = (x_flat, mask_flat, wih_t, bih)
        in_specs = [
            pl.BlockSpec((row_tile, Dp), lambda r: (r, 0)),
            pl.BlockSpec((row_tile, Dp), lambda r: (r, 0)),
            pl.BlockSpec((Dp, N3), lambda r: (0, 0)),
            pl.BlockSpec((1, N3), lambda r: (0, 0)),
        ]
    else:
        kernel = _proj_kernel
        args = (x_flat, wih_t, bih)
        in_specs = [
            pl.BlockSpec((row_tile, Dp), lambda r: (r, 0)),
            pl.BlockSpec((Dp, N3), lambda r: (0, 0)),
            pl.BlockSpec((1, N3), lambda r: (0, 0)),
        ]

    return pl.pallas_call(
        kernel,
        out_shape=jax.ShapeDtypeStruct((TB, N3), jnp.float32),
        grid_spec=pltpu.PrefetchScalarGridSpec(
            num_scalar_prefetch=0,
            grid=grid,
            in_specs=in_specs,
            out_specs=pl.BlockSpec((row_tile, N3), lambda r: (r, 0)),
        ),
        compiler_params=pltpu.CompilerParams(
            dimension_semantics=("parallel",)),
    )(*args)


# --------------------------------------------------------------------------
# Recurrence kernel: only the serially-dependent h-path matmul per step.
# Time axis is chunked; the per-step loop lives inside the kernel and the
# hidden state stays resident in VMEM scratch across grid steps.
# --------------------------------------------------------------------------
def _gru_recurrence_kernel(gi_ref, whh_ref, bhh_ref, out_ref, h_ref,
                           *, t_total, t_chunk):
    c = pl.program_id(1)                       # time-chunk index (sequential)

    @pl.when(c == 0)
    def _():
        h_ref[...] = jnp.zeros_like(h_ref)

    b_tile, Hp = h_ref.shape
    n3 = whh_ref.shape[-1]

    whh = whh_ref[...]                                          # (Hp, 3Hp) bf16
    bhh = jnp.broadcast_to(bhh_ref[...], (b_tile, n3))          # hoisted broadcast

    if t_total % t_chunk == 0:
        n_steps = t_chunk                                       # static bound
    else:
        n_steps = jnp.minimum(t_chunk, t_total - c * t_chunk)

    def step(s, h):
        gi = gi_ref[s]                                          # (b_tile, 3Hp) f32
        gh = jnp.dot(h.astype(whh.dtype), whh,
                     preferred_element_type=jnp.float32) + bhh
        r = jax.nn.sigmoid(gi[:, 0:Hp] + gh[:, 0:Hp])
        z = jax.nn.sigmoid(gi[:, Hp:2 * Hp] + gh[:, Hp:2 * Hp])
        n = jnp.tanh(gi[:, 2 * Hp:3 * Hp] + r * gh[:, 2 * Hp:3 * Hp])
        h_new = (1.0 - z) * n + z * h                           # f32 gate math
        out_ref[s] = h_new.astype(out_ref.dtype)                # VMEM store; slab
        return h_new                                            # DMA'd once/chunk

    h_ref[...] = lax.fori_loop(0, n_steps, step, h_ref[...])


def gru_recurrence(gi, whh_t, bhh, *, t_chunk=None, b_tile=None):
    """gi: (T, Bp, 3Hp) f32 -> out: (T, Bp, Hp) f32."""
    T, Bp, N3 = gi.shape
    Hp = N3 // 3
    if t_chunk is None:
        t_chunk = min(T, 64)
    if b_tile is None:
        b_tile = min(Bp, 256)
    n_bt = pl.cdiv(Bp, b_tile)
    n_tc = pl.cdiv(T, t_chunk)

    kernel = functools.partial(_gru_recurrence_kernel,
                               t_total=T, t_chunk=t_chunk)
    return pl.pallas_call(
        kernel,
        out_shape=jax.ShapeDtypeStruct((T, Bp, Hp), jnp.float32),
        grid_spec=pltpu.PrefetchScalarGridSpec(
            num_scalar_prefetch=0,
            grid=(n_bt, n_tc),
            in_specs=[
                pl.BlockSpec((t_chunk, b_tile, N3), lambda b, c: (c, b, 0)),
                pl.BlockSpec((Hp, N3), lambda b, c: (0, 0)),
                pl.BlockSpec((1, N3), lambda b, c: (0, 0)),
            ],
            out_specs=pl.BlockSpec((t_chunk, b_tile, Hp), lambda b, c: (c, b, 0)),
            scratch_shapes=[pltpu.VMEM((b_tile, Hp), jnp.float32)],
        ),
        compiler_params=pltpu.CompilerParams(
            # batch tiles independent (uses both TCs on v7x); time is sequential
            dimension_semantics=("parallel", "arbitrary")),
    )(gi, whh_t, bhh)


# --------------------------------------------------------------------------
# One-time parameter prep: pad to lane-aligned gate layout, transpose, cast.
# Gate g of the padded 3Hp axis occupies columns [g*Hp, g*Hp + H); padding is
# zero so padded hidden columns stay exactly zero through the recurrence.
# --------------------------------------------------------------------------
def prepare_gru_params(params, input_size):
    prepped = []
    in_size = input_size
    for (w_ih, w_hh, b_ih, b_hh) in params:
        H = w_hh.shape[1]
        Hp = _round_up(H, 128)
        Dp = _round_up(in_size, 128)
        wih_t = jnp.zeros((Dp, 3 * Hp), jnp.float32)
        whh_t = jnp.zeros((Hp, 3 * Hp), jnp.float32)
        bih_p = jnp.zeros((1, 3 * Hp), jnp.float32)
        bhh_p = jnp.zeros((1, 3 * Hp), jnp.float32)
        for g in range(3):
            wih_t = wih_t.at[:in_size, g * Hp:g * Hp + H].set(
                w_ih[g * H:(g + 1) * H, :].T)
            whh_t = whh_t.at[:H, g * Hp:g * Hp + H].set(
                w_hh[g * H:(g + 1) * H, :].T)
            bih_p = bih_p.at[0, g * Hp:g * Hp + H].set(b_ih[g * H:(g + 1) * H])
            bhh_p = bhh_p.at[0, g * Hp:g * Hp + H].set(b_hh[g * H:(g + 1) * H])
        prepped.append(dict(
            wih_t=wih_t.astype(MXU_DTYPE),   # bf16 MXU operands
            whh_t=whh_t.astype(MXU_DTYPE),
            bih=bih_p, bhh=bhh_p,            # f32 biases
            H=H, Hp=Hp, D=in_size, Dp=Dp))
        in_size = H
    return prepped


# --------------------------------------------------------------------------
# BaseRNN forward: input dropout + stacked GRU (Pallas-backed).
# --------------------------------------------------------------------------
def base_rnn_forward(x, prepped, *, input_dropout_p, dropout_p,
                     training=False, rng_key=None):
    """x: (T, B, D) f32.  Returns (output (T,B,H), h_n (n_layers,B,H))."""
    T, B, D = x.shape
    Bp = _round_up(B, 8)
    if training and rng_key is None:
        rng_key = jax.random.PRNGKey(0)

    Dp0 = prepped[0]['Dp']
    x_pad = jnp.zeros((T, Bp, Dp0), jnp.float32).at[:, :B, :D].set(
        x.astype(jnp.float32))
    inp_flat = x_pad.reshape(T * Bp, Dp0)

    h_ns = []
    out = None
    for li, p in enumerate(prepped):
        # dropout mask (host-side jax.random; fused into the projection kernel)
        mask_flat = None
        drop_p = input_dropout_p if li == 0 else dropout_p
        if training and drop_p > 0.0:
            rng_key, sub = jax.random.split(rng_key)
            keep = 1.0 - drop_p
            mask = jax.random.bernoulli(
                sub, keep, (T * Bp, p['Dp'])).astype(jnp.float32) * (1.0 / keep)
            mask_flat = mask

        gi_flat = gru_input_projection(inp_flat, p['wih_t'], p['bih'], mask_flat)
        gi = gi_flat.reshape(T, Bp, 3 * p['Hp'])
        out = gru_recurrence(gi, p['whh_t'], p['bhh'])          # (T, Bp, Hp)

        h_ns.append(out[-1, :B, :p['H']])
        # padded output columns are exactly zero -> feed padded block directly
        inp_flat = out.reshape(T * Bp, p['Hp'])

    output = out[:, :B, :prepped[-1]['H']]
    return output, jnp.stack(h_ns, axis=0)


# --------------------------------------------------------------------------
# Pure-JAX reference (lax.scan GRU) with the SAME numeric policy
# (bf16 MXU operands, f32 accumulation / gate math) for correctness checking.
# --------------------------------------------------------------------------
def gru_ref(x, params):
    inp = x.astype(jnp.float32)
    h_ns = []
    for (w_ih, w_hh, b_ih, b_hh) in params:
        H = w_hh.shape[1]
        B = x.shape[1]
        wih_t = w_ih.T.astype(MXU_DTYPE)
        whh_t = w_hh.T.astype(MXU_DTYPE)

        def step(h, x_t, wih_t=wih_t, whh_t=whh_t, b_ih=b_ih, b_hh=b_hh, H=H):
            gi = jnp.dot(x_t.astype(MXU_DTYPE), wih_t,
                         preferred_element_type=jnp.float32) + b_ih
            gh = jnp.dot(h.astype(MXU_DTYPE), whh_t,
                         preferred_element_type=jnp.float32) + b_hh
            r = jax.nn.sigmoid(gi[:, :H] + gh[:, :H])
            z = jax.nn.sigmoid(gi[:, H:2 * H] + gh[:, H:2 * H])
            n = jnp.tanh(gi[:, 2 * H:] + r * gh[:, 2 * H:])
            h_new = (1.0 - z) * n + z * h
            return h_new, h_new

        h0 = jnp.zeros((B, H), jnp.float32)
        h_last, outs = lax.scan(step, h0, inp)
        h_ns.append(h_last)
        inp = outs
    return inp, jnp.stack(h_ns, axis=0)


# --------------------------------------------------------------------------
if __name__ == "__main__":
    # BaseRNN hyper-params (small, consistent with the module __init__)
    vocab_size = 100          # unused by the base forward (no embedding here)
    max_len = 8               # T
    hidden_size = 32          # H (and input feature size D)
    n_layers = 2
    rnn_cell = "gru"          # TODO(synk): 'lstm' cell path not implemented
    input_dropout_p = 0.1
    dropout_p = 0.1

    T, B, D, H = max_len, 2, hidden_size, hidden_size

    key = jax.random.PRNGKey(0)
    k_x, key = jax.random.split(key)
    x = jax.random.normal(k_x, (T, B, D), dtype=jnp.float32)

    # Deterministic GRU parameters, PyTorch-style uniform(-1/sqrt(H), 1/sqrt(H)).
    bound = 1.0 / (H ** 0.5)
    params = []
    in_size = D
    for _ in range(n_layers):
        key, k1, k2, k3, k4 = jax.random.split(key, 5)
        w_ih = jax.random.uniform(k1, (3 * H, in_size), jnp.float32, -bound, bound)
        w_hh = jax.random.uniform(k2, (3 * H, H), jnp.float32, -bound, bound)
        b_ih = jax.random.uniform(k3, (3 * H,), jnp.float32, -bound, bound)
        b_hh = jax.random.uniform(k4, (3 * H,), jnp.float32, -bound, bound)
        params.append((w_ih, w_hh, b_ih, b_hh))
        in_size = H

    # One-time prep: pad / transpose / bf16-cast the weights.
    prepped = prepare_gru_params(params, input_size=D)

    # Eval-mode run (dropout identity); check against the matched-policy reference.
    out_p, hn_p = base_rnn_forward(
        x, prepped, input_dropout_p=input_dropout_p, dropout_p=dropout_p,
        training=False)
    out_p = jax.block_until_ready(out_p)
    hn_p = jax.block_until_ready(hn_p)

    out_r, hn_r = gru_ref(x, params)
    assert out_p.shape == (T, B, H) and hn_p.shape == (n_layers, B, H)
    assert jnp.allclose(out_p, out_r, rtol=2e-3, atol=2e-3), "output mismatch"
    assert jnp.allclose(hn_p, hn_r, rtol=2e-3, atol=2e-3), "h_n mismatch"

    # Training-mode run exercises the fused-dropout projection path.
    out_t, hn_t = base_rnn_forward(
        x, prepped, input_dropout_p=input_dropout_p, dropout_p=dropout_p,
        training=True, rng_key=jax.random.PRNGKey(123))
    out_t = jax.block_until_ready(out_t)
    hn_t = jax.block_until_ready(hn_t)
    assert out_t.shape == (T, B, H) and hn_t.shape == (n_layers, B, H)

    print("KERNEL_OK")
</pallas_src>

<mosaic_0001>
module attributes {stable_mosaic.version = 11 : i64} {
  func.func @_proj_kernel(%arg0: i32, %arg1: memref<64x128xf32, #tpu.memory_space<vmem>>, %arg2: memref<128x384xbf16, #tpu.memory_space<vmem>>, %arg3: memref<1x384xf32, #tpu.memory_space<vmem>>, %arg4: memref<64x384xf32, #tpu.memory_space<vmem>>) attributes {dimension_semantics = [#tpu.dimension_semantics<parallel>], iteration_bounds = array<i64: 1>, scalar_prefetch = 0 : i64, scratch_operands = 0 : i64, tpu.core_type = #tpu.core_type<tc>, window_params = [{transform_indices = @transform_0, window_bounds = array<i64: 64, 128>}, {pipeline_mode = #tpu.pipeline_mode<synchronous>, transform_indices = @transform_1, window_bounds = array<i64: 128, 384>}, {pipeline_mode = #tpu.pipeline_mode<synchronous>, transform_indices = @transform_2, window_bounds = array<i64: 1, 384>}, {transform_indices = @transform_3, window_bounds = array<i64: 64, 384>}]} {
    %c0 = arith.constant 0 : index
    %c0_0 = arith.constant 0 : index
    %0 = vector.load %arg1[%c0, %c0_0] : memref<64x128xf32, #tpu.memory_space<vmem>>, vector<64x128xf32>
    %1 = arith.truncf %0 : vector<64x128xf32> to vector<64x128xbf16>
    %c0_1 = arith.constant 0 : index
    %c0_2 = arith.constant 0 : index
    %2 = vector.load %arg2[%c0_1, %c0_2] : memref<128x384xbf16, #tpu.memory_space<vmem>>, vector<128x384xbf16>
    %cst = arith.constant dense<0.000000e+00> : vector<64x384xf32>
    %3 = tpu.matmul %1, %2, %cst {dimension_numbers = #tpu.dot_dimension_numbers<[1], [0], [0], [1], [0, 0, 1, 1], [], []>} : vector<64x128xbf16>, vector<128x384xbf16>, vector<64x384xf32> -> vector<64x384xf32>
    %c0_3 = arith.constant 0 : index
    %c0_4 = arith.constant 0 : index
    %4 = vector.load %arg3[%c0_3, %c0_4] : memref<1x384xf32, #tpu.memory_space<vmem>>, vector<1x384xf32>
    %5 = vector.broadcast %4 : vector<1x384xf32> to vector<64x384xf32>
    %6 = arith.addf %3, %5 : vector<64x384xf32>
    %c0_5 = arith.constant 0 : index
    %c0_6 = arith.constant 0 : index
    %7 = vector.load %arg4[%c0_5, %c0_6] : memref<64x384xf32, #tpu.memory_space<vmem>>, vector<64x384xf32>
    tpu.vector_store %arg4[%c0_5, %c0_6], %6 {strides = array<i32>} : memref<64x384xf32, #tpu.memory_space<vmem>>, vector<64x384xf32>,
    return
  }
  func.func @transform_0(%arg0: i32) -> (i32, i32) {
    %c0_i32 = arith.constant 0 : i32
    %c0_i32_0 = arith.constant 0 : i32
    return %arg0, %c0_i32 : i32, i32
  }
  func.func @transform_1(%arg0: i32) -> (i32, i32) {
    %c0_i32 = arith.constant 0 : i32
    %c0_i32_0 = arith.constant 0 : i32
    %c0_i32_1 = arith.constant 0 : i32
    return %c0_i32, %c0_i32_0 : i32, i32
  }
  func.func @transform_2(%arg0: i32) -> (i32, i32) {
    %c0_i32 = arith.constant 0 : i32
    %c0_i32_0 = arith.constant 0 : i32
    %c0_i32_1 = arith.constant 0 : i32
    return %c0_i32, %c0_i32_0 : i32, i32
  }
  func.func @transform_3(%arg0: i32) -> (i32, i32) {
    %c0_i32 = arith.constant 0 : i32
    %c0_i32_0 = arith.constant 0 : i32
    return %arg0, %c0_i32 : i32, i32
  }
}

</mosaic_0001>

<bundles_post_ra>
// kernel: tpu_custom_call.1
= control target key start
LH: loop header
LB: loop body
LE: loop exit
PB: predicated region body
PF: predicated region fallthrough
CT: control target
= control target key end

     0   :  { %8 = vsyncpa [#allocation3], 0  ;;  %s673_s0 = inlined_call_operand.hbm [shape: f32[64,128], index: 0, kind: input, shape index: {}]   ;;  %s674_s1 = inlined_call_operand.hbm [shape: bf16[128,384], index: 1, kind: input, shape index: {}]   ;;  %s675_s2 = inlined_call_operand.hbm [shape: f32[1,384], index: 2, kind: input, shape index: {}]   ;;  %s676_s3 = inlined_call_operand.hbm [shape: f32[64,384], index: 3, kind: output, shape index: {}]  }
   0x1   :  { %9 = vsyncpa [#allocation6], 0  ;;  %s28_s14 = sshll.u32 %s674_s1, 4  ;;  %s29_s14 = int_to_ptr.hbm [resolvable:$true] %s28_s14 }
   0x2   :  { %10 = vsyncpa [#allocation4], 0  ;;  %s611_s15 = smov [#allocation5]   ;;  %s15_s19 = sshll.u32 %s673_s0, 4  ;;  %s16_s19 = int_to_ptr.hbm [resolvable:$true] %s15_s19 }
   0x3   :  { %s30_s16 = sshll.u32 %s611_s15, 4  ;;  %s612_s20 = smov 192   ;;  %s31_s16 = int_to_ptr.vmem [resolvable:$true] %s30_s16 }
   0x4   :  { %s613_s21 = smov 12   ;;  %s614_s22 = smov [#allocation2]  }
   0x5   :  { %36 = dma.hbm_to_vmem [thread:$0]  %s29_s14, 3072, %s31_s16, [#allocation6], %s612_s20, %s612_s20, %s613_s21  }
   0x6   :  { %s17_s23 = sshll.u32 %s614_s22, 4  ;;  %s615_s24 = smov 128   ;;  %s18_s23 = int_to_ptr.vmem [resolvable:$true] %s17_s23 }
   0x7   :  { %s616_s25 = smov 8   ;;  %s42_s27 = sshll.u32 %s675_s2, 4  ;;  %s43_s27 = int_to_ptr.hbm [resolvable:$true] %s42_s27 }
   0x8   :  { %23 = dma.hbm_to_vmem [thread:$0]  %s16_s19, 1024, %s18_s23, [#allocation3], %s615_s24, %s615_s24, %s616_s25  }
   0x9   :  { %s617_s28 = smov [#allocation7]  }
   0xa   :  { %s44_s29 = sshll.u32 %s617_s28, 4  ;;  %s45_s29 = int_to_ptr.vmem [resolvable:$true] %s44_s29 }
   0xb   :  { %47 = dma.hbm_to_vmem [thread:$0]  %s43_s27, 48, %s45_s29, [#allocation6]  }
   0xc   :  { %605 = dma.done.wait [#allocation3], 1024  }
   0xd   :  { %606 = vsyncadd [#allocation3], 4294966272 }
   0xe   :  { %607 = dma.done.wait [#allocation6], 3120  }
   0xf   :  { %608 = vsyncadd [#allocation6], 4294964176  ;;  %v488_v0 = vld [vmem:[#allocation5 + $0xac] sm:$0xf]  ;;  %v459_v1 = vld [vmem:[#allocation5 + $0xb4] sm:$0xf0] }
  0x10   :  { %v465_v2 = vld [vmem:[#allocation5 + $0xb0] sm:$0xf]  ;;  %v462_v3 = vor.u32 %v488_v0, %v459_v1  ;;  %v490_v4 = vld [vmem:[#allocation5 + $0xb8] sm:$0xf0]  ;;  %v485_v5 = vld [vmem:[#allocation5 + $0x94] sm:$0xf] }
  0x11   :  { %v447_v6 = vld [vmem:[#allocation5 + $0x9c] sm:$0xf0]  ;;  %v466_v7 = vor.u32 %v490_v4, %v465_v2  ;;  %v453_v8 = vld [vmem:[#allocation5 + $0x98] sm:$0xf]  ;;  %v487_v9 = vld [vmem:[#allocation5 + $0xa0] sm:$0xf0] }
  0x12   :  { %v457_v10 = vld [vmem:[#allocation5 + $0xa8] sm:$0xf]  ;;  %269 = vmatpush.bf16.msra.mxu1 %v462_v3  ;;  %v450_v11 = vor.u32 %v485_v5, %v447_v6  ;;  %v489_v12 = vld [vmem:[#allocation5 + $0xb0] sm:$0xf0]  ;;  %v454_v13 = vor.u32 %v487_v9, %v453_v8  ;;  %v482_v15 = vld [vmem:[#allocation5 + $0x7c] sm:$0xf] }
  0x13   :  { %298 = vmatpush.bf16.msra.mxu2 %v466_v7  ;;  %v458_v14 = vor.u32 %v489_v12, %v457_v10  ;;  %v435_v16 = vld [vmem:[#allocation5 + $0x84] sm:$0xf0]  ;;  %v445_v17 = vld [vmem:[#allocation5 + $0x90] sm:$0xf]  ;;  %v441_v18 = vld [vmem:[#allocation5 + $0x80] sm:$0xf] }
  0x14   :  { %v484_v19 = vld [vmem:[#allocation5 + $0x88] sm:$0xf0]  ;;  %v486_v20 = vld [vmem:[#allocation5 + $0x98] sm:$0xf0]  ;;  %v438_v22 = vor.u32 %v482_v15, %v435_v16  ;;  %v433_v23 = vld [vmem:[#allocation5 + $0x78] sm:$0xf] }
  0x15   :  { %491 = vmatpush.bf16.msra.mxu3 %v458_v14  ;;  %v446_v21 = vor.u32 %v486_v20, %v445_v17  ;;  %240 = vmatpush.bf16.msra.mxu0 %v458_v14  ;;  %v483_v24 = vld [vmem:[#allocation5 + $0x80] sm:$0xf0]  ;;  %v442_v25 = vor.u32 %v484_v19, %v441_v18  ;;  %v423_v27 = vld [vmem:[#allocation5 + $0x6c] sm:$0xf0]  ;;  %v429_v28 = vld [vmem:[#allocation5 + $0x68] sm:$0xf] }
  0x16   :  { %270 = vmatpush.bf16.msra.mxu1 %v450_v11  ;;  %v479_v26 = vld [vmem:[#allocation5 + $0x64] sm:$0xf]  ;;  %v481_v29 = vld [vmem:[#allocation5 + $0x70] sm:$0xf0]  ;;  %v434_v30 = vor.u32 %v483_v24, %v433_v23  ;;  %v421_v32 = vld [vmem:[#allocation5 + $0x60] sm:$0xf] }
  0x17   :  { %299 = vmatpush.bf16.msra.mxu2 %v454_v13  ;;  %v426_v31 = vor.u32 %v479_v26, %v423_v27  ;;  %v480_v33 = vld [vmem:[#allocation5 + $0x68] sm:$0xf0]  ;;  %v430_v34 = vor.u32 %v481_v29, %v429_v28  ;;  %v411_v36 = vld [vmem:[#allocation5 + $0x54] sm:$0xf0]  ;;  %v417_v37 = vld [vmem:[#allocation5 + $0x50] sm:$0xf] }
  0x18   :  { %v476_v35 = vld [vmem:[#allocation5 + $0x4c] sm:$0xf]  ;;  %v478_v38 = vld [vmem:[#allocation5 + $0x58] sm:$0xf0]  ;;  %v422_v39 = vor.u32 %v480_v33, %v421_v32  ;;  %v409_v41 = vld [vmem:[#allocation5 + $0x48] sm:$0xf] }
  0x19   :  { %492 = vmatpush.bf16.msra.mxu3 %v446_v21  ;;  %241 = vmatpush.bf16.msra.mxu0 %v446_v21  ;;  %v414_v40 = vor.u32 %v476_v35, %v411_v36  ;;  %v477_v42 = vld [vmem:[#allocation5 + $0x50] sm:$0xf0]  ;;  %v418_v43 = vor.u32 %v478_v38, %v417_v37  ;;  %v399_v45 = vld [vmem:[#allocation5 + $0x3c] sm:$0xf0]  ;;  %v405_v46 = vld [vmem:[#allocation5 + $0x38] sm:$0xf] }
  0x1a   :  { %271 = vmatpush.bf16.msra.mxu1 %v438_v22  ;;  %v473_v44 = vld [vmem:[#allocation5 + $0x34] sm:$0xf]  ;;  %v475_v47 = vld [vmem:[#allocation5 + $0x40] sm:$0xf0]  ;;  %v410_v48 = vor.u32 %v477_v42, %v409_v41  ;;  %v397_v50 = vld [vmem:[#allocation5 + $0x30] sm:$0xf] }
  0x1b   :  { %300 = vmatpush.bf16.msra.mxu2 %v442_v25  ;;  %v402_v49 = vor.u32 %v473_v44, %v399_v45  ;;  %v474_v51 = vld [vmem:[#allocation5 + $0x38] sm:$0xf0]  ;;  %v406_v52 = vor.u32 %v475_v47, %v405_v46  ;;  %v387_v54 = vld [vmem:[#allocation5 + $0x24] sm:$0xf0]  ;;  %v393_v55 = vld [vmem:[#allocation5 + $0x20] sm:$0xf] }
  0x1c   :  { %v470_v53 = vld [vmem:[#allocation5 + $0x1c] sm:$0xf]  ;;  %v472_v56 = vld [vmem:[#allocation5 + $0x28] sm:$0xf0]  ;;  %v398_v57 = vor.u32 %v474_v51, %v397_v50  ;;  %v385_v59 = vld [vmem:[#allocation5 + $0x18] sm:$0xf] }
  0x1d   :  { %493 = vmatpush.bf16.msra.mxu3 %v434_v30  ;;  %242 = vmatpush.bf16.msra.mxu0 %v434_v30  ;;  %v390_v58 = vor.u32 %v470_v53, %v387_v54  ;;  %v471_v60 = vld [vmem:[#allocation5 + $0x20] sm:$0xf0]  ;;  %v394_v61 = vor.u32 %v472_v56, %v393_v55  ;;  %v375_v63 = vld [vmem:[#allocation5 + $0xc] sm:$0xf0]  ;;  %v381_v0 = vld [vmem:[#allocation5 + $0x8] sm:$0xf] }
  0x1e   :  { %272 = vmatpush.bf16.msra.mxu1 %v426_v31  ;;  %v467_v62 = vld [vmem:[#allocation5 + $0x4] sm:$0xf]  ;;  %v469_v1 = vld [vmem:[#allocation5 + $0x10] sm:$0xf0]  ;;  %v386_v3 = vor.u32 %v471_v60, %v385_v59  ;;  %v61_v5 = vld [vmem:[#allocation2 + $0x8] sm:$0xff]  ;;  %s618_s0 = smov [#allocation8]  }
  0x1f   :  { %301 = vmatpush.bf16.msra.mxu2 %v430_v34  ;;  %v60_v2 = vld [vmem:[#allocation2] sm:$0xff]  ;;  %v378_v4 = vor.u32 %v467_v62, %v375_v63  ;;  %v468_v7 = vld [vmem:[#allocation5 + $0x8] sm:$0xf0]  ;;  %v382_v8 = vor.u32 %v469_v1, %v381_v0  ;;  %v62_v11 = vld [vmem:[#allocation2 + $0x10] sm:$0xff]  ;;  %s355_s2 = sshll.u32 %s618_s0, 4  ;;  %s357_s5 = sshll.u32 %s676_s3, 4  ;;  %s356_s2 = int_to_ptr.vmem [resolvable:$true] %s355_s2  ;;  %s358_s5 = int_to_ptr.hbm [resolvable:$true] %s357_s5 }
  0x20   :  { %v373_v6 = vld [vmem:[#allocation5] sm:$0xf]  ;;  %v68_v9 = vpack.c.bf16 %v61_v5, %v60_v2  ;;  %v63_v12 = vld [vmem:[#allocation2 + $0x18] sm:$0xff]  ;;  %v65_v15 = vld [vmem:[#allocation2 + $0x28] sm:$0xff]  ;;  %s619_s6 = smov 384   ;;  %s620_s7 = smov 24  }
  0x21   :  { %494 = vmatpush.bf16.msra.mxu3 %v422_v39  ;;  %243 = vmatpush.bf16.msra.mxu0 %v422_v39  ;;  %v374_v10 = vor.u32 %v468_v7, %v373_v6  ;;  %v69_v13 = vpack.c.bf16 %v63_v12, %v62_v11  ;;  %v64_v14 = vld [vmem:[#allocation2 + $0x20] sm:$0xff]  ;;  %v66_v17 = vld [vmem:[#allocation2 + $0x30] sm:$0xff]  ;;  %v67_v18 = vld [vmem:[#allocation2 + $0x38] sm:$0xff] }
  0x22   :  { %273 = vmatpush.bf16.msra.mxu1 %v414_v40  ;;  %v70_v16 = vpack.c.bf16 %v65_v15, %v64_v14  ;;  %v71_v19 = vpack.c.bf16 %v67_v18, %v66_v17  ;;  %v104_v20 = vld [vmem:[#allocation7] sm:$0x7] }
  0x23   :  { %302 = vmatpush.bf16.msra.mxu2 %v418_v43  ;;  %v650_v21 = vperm.slane %v104_v20, 1  ;;  %v653_v24 = vperm.slane %v104_v20, 2  ;;  %v106_v25 = vperm.slane %v104_v20, 0 }
  0x25   :  { %495 = vmatpush.bf16.msra.mxu3 %v410_v48  ;;  %244 = vmatpush.bf16.msra.mxu0 %v410_v48 }
  0x26   :  { %274 = vmatpush.bf16.msra.mxu1 %v402_v49 }
  0x27   :  { %303 = vmatpush.bf16.msra.mxu2 %v406_v52 }
  0x29   :  { %496 = vmatpush.bf16.msra.mxu3 %v398_v57  ;;  %245 = vmatpush.bf16.msra.mxu0 %v398_v57 }
  0x2a   :  { %275 = vmatpush.bf16.msra.mxu1 %v390_v58 }
  0x2b   :  { %304 = vmatpush.bf16.msra.mxu2 %v394_v61 }
  0x2d   :  { %497 = vmatpush.bf16.msra.mxu3 %v386_v3  ;;  %246 = vmatpush.bf16.msra.mxu0 %v386_v3 }
  0x2e   :  { %276 = vmatpush.bf16.msra.mxu1 %v378_v4 }
  0x2f   :  { %305 = vmatpush.bf16.msra.mxu2 %v382_v8 }
  0x31   :  { %277 = vmatmul.bf16.vlgmr.msra.gmra.mxu1 %v68_v9  ;;  %498 = vmatpush.bf16.msra.mxu3 %v374_v10 }
  0x32   :  { %306 = vmatmul.bf16.vlgmr.msra.gmra.mxu2 %v68_v9  ;;  %247 = vmatpush.bf16.msra.mxu0 %v374_v10 }
  0x34   :  { %253 = vmatmul.bf16.vlgmr.msra.gmra.mxu3 %v69_v13 }
  0x35   :  { %248 = vmatmul.bf16.vlgmr.msra.gmra.mxu0 %v68_v9 }
  0x41   :  { %282 = vmatmul.bf16.gmra.mxu1 %v69_v13 }
  0x42   :  { %311 = vmatmul.bf16.gmra.mxu2 %v69_v13 }
  0x44   :  { %258 = vmatmul.bf16.gmra.mxu3 %v70_v16 }
  0x51   :  { %287 = vmatmul.bf16.gmra.mxu1 %v70_v16 }
  0x52   :  { %316 = vmatmul.bf16.gmra.mxu2 %v70_v16 }
  0x54   :  { %263 = vmatmul.bf16.gmra.mxu3 %v71_v19 }
  0x61   :  { %292 = vmatmul.bf16.gmra.mxu1 %v71_v19 }
  0x62   :  { %321 = vmatmul.bf16.gmra.mxu2 %v71_v19 }
  0xae   :  { %v278_v22 = vpop.f32.mrf.mxu1 }
  0xaf   :  { %v279_v23 = vadd.f32 %v278_v22, %v650_v21 }
  0xb1   :  { %328 = vst [vmem:[#allocation8 + $0x8] sm:$0xff] %v279_v23 }
  0xb2   :  { %v249_v32 = vpop.f32.mrf.mxu0 }
  0xb3   :  { %v250_v33 = vadd.f32 %v249_v32, %v106_v25 }
  0xb5   :  { %v307_v26 = vpop.f32.mrf.mxu2  ;;  %327 = vst [vmem:[#allocation8] sm:$0xff] %v250_v33 }
  0xb6   :  { %v308_v27 = vadd.f32 %v307_v26, %v653_v24  ;;  %v280_v28 = vpop.f32.mrf.mxu1 }
  0xb7   :  { %v281_v29 = vadd.f32 %v280_v28, %v650_v21  ;;  %v254_v30 = vpop.f32.mrf.mxu3 }
  0xb8   :  { %329 = vst [vmem:[#allocation8 + $0x10] sm:$0xff] %v308_v27  ;;  %v255_v31 = vadd.f32 %v254_v30, %v106_v25 }
  0xb9   :  { %331 = vst [vmem:[#allocation8 + $0x20] sm:$0xff] %v281_v29 }
  0xba   :  { %333 = vst [vmem:[#allocation8 + $0x30] sm:$0xff] %v255_v31  ;;  %v251_v40 = vpop.f32.mrf.mxu0 }
  0xbb   :  { %v252_v41 = vadd.f32 %v251_v40, %v106_v25 }
  0xbd   :  { %v309_v34 = vpop.f32.mrf.mxu2  ;;  %330 = vst [vmem:[#allocation8 + $0x18] sm:$0xff] %v252_v41 }
  0xbe   :  { %v310_v35 = vadd.f32 %v309_v34, %v653_v24  ;;  %v283_v36 = vpop.f32.mrf.mxu1 }
  0xbf   :  { %v284_v37 = vadd.f32 %v283_v36, %v650_v21  ;;  %v256_v38 = vpop.f32.mrf.mxu3 }
  0xc0   :  { %332 = vst [vmem:[#allocation8 + $0x28] sm:$0xff] %v310_v35  ;;  %v257_v39 = vadd.f32 %v256_v38, %v106_v25 }
  0xc1   :  { %334 = vst [vmem:[#allocation8 + $0x38] sm:$0xff] %v284_v37 }
  0xc2   :  { %336 = vst [vmem:[#allocation8 + $0x48] sm:$0xff] %v257_v39 }
  0xc5   :  { %v312_v42 = vpop.f32.mrf.mxu2 }
  0xc6   :  { %v313_v43 = vadd.f32 %v312_v42, %v653_v24  ;;  %v285_v44 = vpop.f32.mrf.mxu1 }
  0xc7   :  { %v286_v45 = vadd.f32 %v285_v44, %v650_v21  ;;  %v259_v46 = vpop.f32.mrf.mxu3 }
  0xc8   :  { %335 = vst [vmem:[#allocation8 + $0x40] sm:$0xff] %v313_v43  ;;  %v260_v47 = vadd.f32 %v259_v46, %v106_v25 }
  0xc9   :  { %337 = vst [vmem:[#allocation8 + $0x50] sm:$0xff] %v286_v45 }
  0xca   :  { %339 = vst [vmem:[#allocation8 + $0x60] sm:$0xff] %v260_v47 }
  0xcd   :  { %v314_v48 = vpop.f32.mrf.mxu2 }
  0xce   :  { %v315_v49 = vadd.f32 %v314_v48, %v653_v24  ;;  %v288_v50 = vpop.f32.mrf.mxu1 }
  0xcf   :  { %v289_v51 = vadd.f32 %v288_v50, %v650_v21  ;;  %v261_v52 = vpop.f32.mrf.mxu3 }
  0xd0   :  { %338 = vst [vmem:[#allocation8 + $0x58] sm:$0xff] %v315_v49  ;;  %v262_v53 = vadd.f32 %v261_v52, %v106_v25 }
  0xd1   :  { %340 = vst [vmem:[#allocation8 + $0x68] sm:$0xff] %v289_v51 }
  0xd2   :  { %342 = vst [vmem:[#allocation8 + $0x78] sm:$0xff] %v262_v53 }
  0xd5   :  { %v317_v54 = vpop.f32.mrf.mxu2 }
  0xd6   :  { %v318_v55 = vadd.f32 %v317_v54, %v653_v24  ;;  %v290_v56 = vpop.f32.mrf.mxu1 }
  0xd7   :  { %v291_v57 = vadd.f32 %v290_v56, %v650_v21  ;;  %v264_v58 = vpop.f32.mrf.mxu3 }
  0xd8   :  { %341 = vst [vmem:[#allocation8 + $0x70] sm:$0xff] %v318_v55  ;;  %v265_v59 = vadd.f32 %v264_v58, %v106_v25 }
  0xd9   :  { %343 = vst [vmem:[#allocation8 + $0x80] sm:$0xff] %v291_v57 }
  0xda   :  { %345 = vst [vmem:[#allocation8 + $0x90] sm:$0xff] %v265_v59 }
  0xdd   :  { %v319_v60 = vpop.f32.mrf.mxu2 }
  0xde   :  { %v320_v61 = vadd.f32 %v319_v60, %v653_v24  ;;  %v293_v62 = vpop.f32.mrf.mxu1 }
  0xdf   :  { %v294_v63 = vadd.f32 %v293_v62, %v650_v21  ;;  %v266_v0 = vpop.f32.mrf.mxu3 }
  0xe0   :  { %344 = vst [vmem:[#allocation8 + $0x88] sm:$0xff] %v320_v61  ;;  %v267_v1 = vadd.f32 %v266_v0, %v106_v25 }
  0xe1   :  { %346 = vst [vmem:[#allocation8 + $0x98] sm:$0xff] %v294_v63 }
  0xe2   :  { %348 = vst [vmem:[#allocation8 + $0xa8] sm:$0xff] %v267_v1 }
  0xe5   :  { %v322_v2 = vpop.f32.mrf.mxu2 }
  0xe6   :  { %v323_v3 = vadd.f32 %v322_v2, %v653_v24  ;;  %v295_v4 = vpop.f32.mrf.mxu1 }
  0xe7   :  { %v296_v5 = vadd.f32 %v295_v4, %v650_v21 }
  0xe8   :  { %347 = vst [vmem:[#allocation8 + $0xa0] sm:$0xff] %v323_v3 }
  0xe9   :  { %349 = vst [vmem:[#allocation8 + $0xb0] sm:$0xff] %v296_v5 }
  0xed   :  { %v324_v6 = vpop.f32.mrf.mxu2 }
  0xee   :  { %v325_v7 = vadd.f32 %v324_v6, %v653_v24 }
  0xf0   :  { %350 = vst [vmem:[#allocation8 + $0xb8] sm:$0xff] %v325_v7 }
  0xf1   :  { %363 = dma.vmem_to_hbm [thread:$0]  %s356_s2, 3072, %s358_s5, [#allocation4], %s619_s6, %s619_s6, %s620_s7  }
  0xf2   :  { %609 = dma.done.wait [#allocation4], 3072  }
  0xf3   :  { %610 = vsyncadd [#allocation4], 4294964224 }
  0xf4   :  { %368 = vsyncpa [#allocation3], 1 }
  0xf5   :  { %369 = vsyncpa [#allocation6], 1 }
  0xf6   :  { %370 = vsyncpa [#allocation4], 1 }

</bundles_post_ra>
